<compile_context>
chip_gen: v5e
topology: v5e:2x2
jax: 0.10.0
libtpu: 0.0.40
codegen_flags: <defaults>
</compile_context>

<pallas_src>
import functools

import numpy as np
import jax
import jax.numpy as jnp
from jax.experimental import pallas as pl
from jax.experimental.pallas import tpu as pltpu

LANE = 128


def _round_up(x, m):
    return ((x + m - 1) // m) * m


# ---------------------------------------------------------------------------
# 1) ResNetFPNDirectPose.preprocess_image normalization
# ---------------------------------------------------------------------------
def _normalize_kernel(x_ref, scale_ref, bias_ref, o_ref):
    # out = x * (1/(255*std_c)) - mean_c/std_c   ==  (x/255 - mean_c)/std_c
    o_ref[...] = (
        x_ref[...].astype(jnp.float32) * scale_ref[...] + bias_ref[...]
    ).astype(o_ref.dtype)


def directpose_preprocess(images,
                          pixel_mean=(0.485, 0.456, 0.406),
                          pixel_std=(0.229, 0.224, 0.225)):
    """Pallas version of ResNetFPNDirectPose.preprocess_image normalization.

    images: (N, C, H, W).  Returns (N, C, H, W) float32.
    """
    N, C, H, W = images.shape
    R, HW = N * C, H * W

    mean = np.asarray(pixel_mean, np.float32)
    std = np.asarray(pixel_std, np.float32)
    scale = np.tile(1.0 / (255.0 * std), N).reshape(R, 1)
    bias = np.tile(-mean / std, N).reshape(R, 1)

    # Row tiling (parallel grid).  Cap the per-step footprint so double-buffered
    # in+out blocks stay a few MiB (well under v7x's 64 MiB VMEM).
    max_rows_by_vmem = max(8, ((4 * 1024 * 1024) // (max(HW, 1) * 4)) // 8 * 8)
    tr = min(_round_up(R, 8), 256, max_rows_by_vmem)
    r_pad = _round_up(R, tr)
    n_rt = r_pad // tr
    # TODO(synk): for very large H*W also tile the pixel axis (multiple of 128).

    x2 = jnp.pad(images.reshape(R, HW), ((0, r_pad - R), (0, 0)))
    scale_j = jnp.asarray(np.pad(scale, ((0, r_pad - R), (0, 0))))
    bias_j = jnp.asarray(np.pad(bias, ((0, r_pad - R), (0, 0))))

    out = pl.pallas_call(
        _normalize_kernel,
        out_shape=jax.ShapeDtypeStruct((r_pad, HW), jnp.float32),
        grid_spec=pltpu.PrefetchScalarGridSpec(
            num_scalar_prefetch=0,
            grid=(n_rt,),
            in_specs=[
                pl.BlockSpec((tr, HW), lambda r: (r, 0)),
                pl.BlockSpec((tr, 1), lambda r: (r, 0)),
                pl.BlockSpec((tr, 1), lambda r: (r, 0)),
            ],
            out_specs=pl.BlockSpec((tr, HW), lambda r: (r, 0)),
        ),
        compiler_params=pltpu.CompilerParams(
            dimension_semantics=("parallel",)),
        cost_estimate=pl.CostEstimate(
            flops=2 * R * HW,
            transcendentals=0,
            bytes_accessed=R * HW * (images.dtype.itemsize + 4)),
    )(x2, scale_j, bias_j)

    return out[:R].reshape(N, C, H, W)


# ---------------------------------------------------------------------------
# 2) Downsample1D (anti-aliased stride-2 downsample, binomial filter)
# ---------------------------------------------------------------------------
def _binomial_taps(filt_size):
    table = {
        1: [1.0],
        2: [1.0, 1.0],
        3: [1.0, 2.0, 1.0],
        4: [1.0, 3.0, 3.0, 1.0],
        5: [1.0, 4.0, 6.0, 4.0, 1.0],
        6: [1.0, 5.0, 10.0, 10.0, 5.0, 1.0],
        7: [1.0, 6.0, 15.0, 20.0, 15.0, 6.0, 1.0],
    }
    a = np.asarray(table[filt_size], dtype=np.float64)
    return (a / a.sum()).astype(np.float32)


@functools.lru_cache(maxsize=None)
def _band_matrices(filt_size, stride, tl_out, dtype_str):
    """Small, L-independent filter bands shared by every output tile.

    W_main: (stride*tl_out, tl_out)   -- taps that stay inside the input tile
    W_carry: (128, tl_out)            -- taps that spill into the next tile
    Binomial taps are dyadic rationals, so casting to bf16/f32 is exact.
    """
    taps = _binomial_taps(filt_size)
    tl_in = stride * tl_out
    wm = np.zeros((tl_in, tl_out), np.float32)
    wc = np.zeros((LANE, tl_out), np.float32)
    for j in range(tl_out):
        for k in range(filt_size):
            i = stride * j + k
            if i < tl_in:
                wm[i, j] = taps[k]
            else:
                wc[i - tl_in, j] = taps[k]
    dt = jnp.dtype(dtype_str)
    return jnp.asarray(wm, dt), jnp.asarray(wc, dt)


def _downsample1d_kernel(x_ref, xnext_ref, wm_ref, wc_ref, o_ref):
    # (TR, TLin) @ (TLin, TLout)  +  (TR, 128) @ (128, TLout), f32 accumulation.
    acc = jnp.dot(x_ref[...], wm_ref[...], preferred_element_type=jnp.float32)
    acc = acc + jnp.dot(xnext_ref[...], wc_ref[...],
                        preferred_element_type=jnp.float32)
    o_ref[...] = acc.astype(o_ref.dtype)


def downsample1d(x, pad_type="reflect", filt_size=3, stride=2, pad_off=0,
                 row_tile=256, out_tile=256):
    """Downsample1D.forward for x of shape (N, C, L) -> (N, C, L_out)."""
    N, C, L = x.shape
    R = N * C
    dt = x.dtype

    pad_l = (filt_size - 1) // 2 + pad_off
    pad_r = -((filt_size - 1) // -2) + pad_off          # ceil((f-1)/2) + off
    L_pad = L + pad_l + pad_r
    L_out = (L_pad - filt_size) // stride + 1           # also == ::stride length for f=1

    x2 = x.reshape(R, L)
    if pad_l or pad_r:
        mode = {"refl": "reflect", "reflect": "reflect",
                "repl": "edge", "replicate": "edge",
                "zero": "constant"}[pad_type]
        # TODO(synk): the boundary pad is still one host-side pass over x; it
        # could be fused into the kernel with an explicit halo + pl.when.
        x2 = jnp.pad(x2, ((0, 0), (pad_l, pad_r)), mode=mode)

    # --- tiling: lane-dense output tiles, O(1)-sized filter band ---
    tl_out = min(_round_up(L_out, LANE), out_tile)      # multiple of 128
    tl_in = stride * tl_out                             # multiple of 128
    n_ct = pl.cdiv(L_out, tl_out)
    lout_pad = n_ct * tl_out
    lin_ext = (n_ct + 1) * tl_in                        # +1 zero tile so the
                                                        # halo view is in bounds
    tr = min(_round_up(R, 8), row_tile)
    r_pad = _round_up(R, tr)
    n_rt = r_pad // tr

    # Zero-extend (rows to a tile multiple, length to the extended tiling).
    x2 = jnp.pad(x2, ((0, r_pad - R), (0, lin_ext - L_pad)))

    wm, wc = _band_matrices(filt_size, stride, tl_out, str(jnp.dtype(dt)))
    blocks_per_tile = tl_in // LANE

    # Honest cost: 2 * rows * taps * outputs FLOPs, streaming bytes only.
    flops = 2 * R * filt_size * L_out
    bytes_accessed = (R * L + R * L_out) * jnp.dtype(dt).itemsize \
        + (wm.size + wc.size) * wm.dtype.itemsize

    # Per-step VMEM footprint (double-buffered) is ~2-3 MiB for the default
    # tiles, comfortably inside v7x's 64 MiB / default scoped limits.
    out = pl.pallas_call(
        _downsample1d_kernel,
        out_shape=jax.ShapeDtypeStruct((r_pad, lout_pad), dt),
        grid_spec=pltpu.PrefetchScalarGridSpec(
            num_scalar_prefetch=0,
            grid=(n_rt, n_ct),
            in_specs=[
                # current input tile
                pl.BlockSpec((tr, tl_in), lambda r, c: (r, c)),
                # 128-lane halo view of the next input tile (for the taps that
                # straddle the tile boundary)
                pl.BlockSpec((tr, LANE),
                             lambda r, c: (r, (c + 1) * blocks_per_tile)),
                # shared filter bands, reused by every grid step
                pl.BlockSpec((tl_in, tl_out), lambda r, c: (0, 0)),
                pl.BlockSpec((LANE, tl_out), lambda r, c: (0, 0)),
            ],
            out_specs=pl.BlockSpec((tr, tl_out), lambda r, c: (r, c)),
        ),
        compiler_params=pltpu.CompilerParams(
            dimension_semantics=("parallel", "parallel")),
        cost_estimate=pl.CostEstimate(flops=flops, transcendentals=0,
                                      bytes_accessed=bytes_accessed),
    )(x2, x2, wm, wc)

    return out[:R, :L_out].reshape(N, C, L_out)


# ---------------------------------------------------------------------------
# Pure-JAX references (verification only)
# ---------------------------------------------------------------------------
def _downsample1d_reference(x, pad_type="reflect", filt_size=3, stride=2,
                            pad_off=0):
    N, C, L = x.shape
    pad_l = (filt_size - 1) // 2 + pad_off
    pad_r = -((filt_size - 1) // -2) + pad_off
    if pad_l or pad_r:
        mode = {"refl": "reflect", "reflect": "reflect",
                "repl": "edge", "replicate": "edge",
                "zero": "constant"}[pad_type]
        xp = jnp.pad(x, ((0, 0), (0, 0), (pad_l, pad_r)), mode=mode)
    else:
        xp = x
    taps = _binomial_taps(filt_size)
    L_pad = xp.shape[-1]
    L_out = (L_pad - filt_size) // stride + 1
    acc = jnp.zeros(x.shape[:2] + (L_out,), jnp.float32)
    for k in range(filt_size):
        acc = acc + taps[k] * xp[:, :, k:k + stride * (L_out - 1) + 1:stride] \
            .astype(jnp.float32)
    return acc.astype(x.dtype)


if __name__ == "__main__":
    key = jax.random.PRNGKey(0)
    k1, k2 = jax.random.split(key)

    # --- ResNetFPNDirectPose.preprocess_image normalization ---
    images = jax.random.uniform(k1, (2, 3, 16, 16), jnp.float32) * 255.0
    norm = jax.block_until_ready(directpose_preprocess(images))
    mean = np.array([0.485, 0.456, 0.406], np.float32).reshape(1, 3, 1, 1)
    std = np.array([0.229, 0.224, 0.225], np.float32).reshape(1, 3, 1, 1)
    norm_ref = (np.asarray(images) / 255.0 - mean) / std
    np.testing.assert_allclose(np.asarray(norm), norm_ref, rtol=1e-5, atol=1e-5)

    # --- anti-aliased Downsample1D block (binomial filt=3, stride=2, reflect) ---
    x = jax.random.normal(k2, (2, 4, 16), jnp.float32)
    out = jax.block_until_ready(downsample1d(x, "reflect", 3, 2, 0))
    assert out.shape == (2, 4, 8), out.shape
    ref = _downsample1d_reference(x, "reflect", 3, 2, 0)
    np.testing.assert_allclose(np.asarray(out), np.asarray(ref),
                               rtol=1e-5, atol=1e-5)

    print("KERNEL_OK")
</pallas_src>

<mosaic_0001>
module attributes {stable_mosaic.version = 11 : i64} {
  func.func @_normalize_kernel(%arg0: i32, %arg1: memref<8x256xf32, #tpu.memory_space<vmem>>, %arg2: memref<8x1xf32, #tpu.memory_space<vmem>>, %arg3: memref<8x1xf32, #tpu.memory_space<vmem>>, %arg4: memref<8x256xf32, #tpu.memory_space<vmem>>) attributes {dimension_semantics = [#tpu.dimension_semantics<parallel>], iteration_bounds = array<i64: 1>, scalar_prefetch = 0 : i64, scratch_operands = 0 : i64, tpu.core_type = #tpu.core_type<tc>, window_params = [{transform_indices = @transform_0, window_bounds = array<i64: 8, 256>}, {transform_indices = @transform_1, window_bounds = array<i64: 8, 1>}, {transform_indices = @transform_2, window_bounds = array<i64: 8, 1>}, {transform_indices = @transform_3, window_bounds = array<i64: 8, 256>}]} {
    %c0 = arith.constant 0 : index
    %c0_0 = arith.constant 0 : index
    %0 = vector.load %arg1[%c0, %c0_0] : memref<8x256xf32, #tpu.memory_space<vmem>>, vector<8x256xf32>
    %c0_1 = arith.constant 0 : index
    %c0_2 = arith.constant 0 : index
    %1 = vector.load %arg2[%c0_1, %c0_2] : memref<8x1xf32, #tpu.memory_space<vmem>>, vector<8x1xf32>
    %2 = vector.broadcast %1 : vector<8x1xf32> to vector<8x256xf32>
    %3 = arith.mulf %0, %2 : vector<8x256xf32>
    %c0_3 = arith.constant 0 : index
    %c0_4 = arith.constant 0 : index
    %4 = vector.load %arg3[%c0_3, %c0_4] : memref<8x1xf32, #tpu.memory_space<vmem>>, vector<8x1xf32>
    %5 = vector.broadcast %4 : vector<8x1xf32> to vector<8x256xf32>
    %6 = arith.addf %3, %5 : vector<8x256xf32>
    %c0_5 = arith.constant 0 : index
    %c0_6 = arith.constant 0 : index
    %7 = vector.load %arg4[%c0_5, %c0_6] : memref<8x256xf32, #tpu.memory_space<vmem>>, vector<8x256xf32>
    tpu.vector_store %arg4[%c0_5, %c0_6], %6 {strides = array<i32>} : memref<8x256xf32, #tpu.memory_space<vmem>>, vector<8x256xf32>,
    return
  }
  func.func @transform_0(%arg0: i32) -> (i32, i32) {
    %c0_i32 = arith.constant 0 : i32
    %c0_i32_0 = arith.constant 0 : i32
    return %arg0, %c0_i32 : i32, i32
  }
  func.func @transform_1(%arg0: i32) -> (i32, i32) {
    %c0_i32 = arith.constant 0 : i32
    %c0_i32_0 = arith.constant 0 : i32
    return %arg0, %c0_i32 : i32, i32
  }
  func.func @transform_2(%arg0: i32) -> (i32, i32) {
    %c0_i32 = arith.constant 0 : i32
    %c0_i32_0 = arith.constant 0 : i32
    return %arg0, %c0_i32 : i32, i32
  }
  func.func @transform_3(%arg0: i32) -> (i32, i32) {
    %c0_i32 = arith.constant 0 : i32
    %c0_i32_0 = arith.constant 0 : i32
    return %arg0, %c0_i32 : i32, i32
  }
}

</mosaic_0001>

<bundles_post_ra>
// kernel: tpu_custom_call.1
= control target key start
LH: loop header
LB: loop body
LE: loop exit
PB: predicated region body
PF: predicated region fallthrough
CT: control target
= control target key end

     0   :  { %s117_s0 = inlined_call_operand.vmem [shape: f32[8,256], index: 0, kind: input, shape index: {}]   ;;  %s118_s1 = inlined_call_operand.vmem [shape: f32[8,1], index: 1, kind: input, shape index: {}]   ;;  %s119_s2 = inlined_call_operand.vmem [shape: f32[8,1], index: 2, kind: input, shape index: {}]   ;;  %s120_s3 = inlined_call_operand.hbm [shape: f32[8,256], index: 3, kind: output, shape index: {}]  }
   0x1   :  { %v17_v0 = vld [vmem:[%s118_s1] sm:$0xff] }
   0x2   :  { %8 = vsyncpa [#allocation3], 0  ;;  %v80_v1 = vmov 0   ;;  %v25_v2 = vld [vmem:[%s119_s2] sm:$0xff]  ;;  %v16_v5 = vld [vmem:[%s117_s0 + $0x8] sm:$0xff]  ;;  %s81_s1 = smov [#allocation2]  }
   0x3   :  { %53 = vset.pattern.permute.xlu0 %v80_v1  ;;  %v15_v4 = vld [vmem:[%s117_s0] sm:$0xff]  ;;  %s40_s20 = sshll.u32 %s81_s1, 4  ;;  %s42_s23 = sshll.u32 %s120_s3, 4  ;;  %s41_s20 = int_to_ptr.vmem [resolvable:$true] %s40_s20  ;;  %s43_s23 = int_to_ptr.hbm [resolvable:$true] %s42_s23 }
   0x4   :  { %20 = vperm.xlu0 %53, %v17_v0  }
   0xc   :  { %28 = vperm.xlu0 %53, %v25_v2  }
  0x76   :  { %v21_v3 = vpop.permute.xlu0 %20 }
  0x77   :  { %v23_v6 = vmul.f32 %v21_v3, %v15_v4  ;;  %v24_v7 = vmul.f32 %v21_v3, %v16_v5 }
  0x7e   :  { %v29_v8 = vpop.permute.xlu0 %28 }
  0x7f   :  { %v31_v9 = vadd.f32 %v29_v8, %v23_v6  ;;  %v32_v10 = vadd.f32 %v29_v8, %v24_v7 }
  0x81   :  { %33 = vst [vmem:[#allocation2] sm:$0xff] %v31_v9 }
  0x82   :  { %34 = vst [vmem:[#allocation2 + $0x8] sm:$0xff] %v32_v10 }
  0x83   :  { %45 = dma.vmem_to_hbm [thread:$0]  %s41_s20, 256, %s43_s23, [#allocation3]  }
  0x84   :  { %78 = dma.done.wait [#allocation3], 256  }
  0x85   :  { %79 = vsyncadd [#allocation3], 4294967040 }
  0x86   :  { %50 = vsyncpa [#allocation3], 1 }

</bundles_post_ra>
